<compile_context>
chip_gen: v5e
topology: v5e:2x2
jax: 0.10.0
libtpu: 0.0.40
codegen_flags: <defaults>
</compile_context>

<pallas_src>
import math
import functools

import jax
import jax.numpy as jnp
from jax import lax
from jax.experimental import pallas as pl
from jax.experimental.pallas import tpu as pltpu

LN_EPS = 1e-5          # nn.LayerNorm default
LANE = 128             # TPU lane width


def _round_up(v, m):
    return (v + m - 1) // m * m


@functools.lru_cache(maxsize=None)
def _vmem_capacity_bytes():
    """Physical VMEM of the local TPU generation (fallback: v7x's 64 MiB)."""
    try:
        info = pltpu.get_tpu_info()
        for attr in ("vmem_capacity_bytes", "vmem_bytes", "vmem_size_bytes"):
            v = getattr(info, attr, None)
            if v:
                return int(v)
    except Exception:
        pass
    return 64 * 1024 * 1024


@functools.lru_cache(maxsize=None)
def _single_buffer_ok():
    """Probe whether BlockSpec(pipeline_mode=pl.Buffered(1)) is supported here."""
    try:
        def _k(x_ref, o_ref):
            o_ref[...] = x_ref[...] + 1.0

        fn = pl.pallas_call(
            _k,
            out_shape=jax.ShapeDtypeStruct((8, 128), jnp.float32),
            grid=(2,),
            in_specs=[pl.BlockSpec((8, 128), lambda i: (0, 0),
                                   pipeline_mode=pl.Buffered(1))],
            out_specs=pl.BlockSpec((8, 128), lambda i: (0, 0)),
        )
        jax.block_until_ready(fn(jnp.zeros((8, 128), jnp.float32)))
        return True
    except Exception:
        return False


def _const_spec(block_shape):
    """BlockSpec for a grid-invariant operand; single-buffered when supported."""
    nd = len(block_shape)
    idx = lambda n, t: (0,) * nd
    if _single_buffer_ok():
        return pl.BlockSpec(block_shape, idx, pipeline_mode=pl.Buffered(1))
    return pl.BlockSpec(block_shape, idx)


def _choose_time_tile(T, layer_dims, itemsize, max_k):
    """Largest time tile (multiple of 8) whose per-step working set fits VMEM.

    layer_dims: list of (cin_pad, cout_pad), lane-padded, one per layer.
    """
    cap = _vmem_capacity_bytes()
    budget = int(0.55 * cap)                     # leave headroom for the compiler
    weight_bufs = 1 if _single_buffer_ok() else 2
    per_row, fixed = 1, 0
    for cin_pad, cout_pad in layer_dims:
        # x double-buffer + window scratch + out double-buffer + f32 temporaries
        per_row = max(per_row,
                      (3 * cin_pad + 2 * cout_pad) * itemsize + 6 * cout_pad * 4)
        # conv weight (+ worst case a 1x1 residual projection)
        fixed = max(fixed,
                    weight_bufs * (max_k + 1) * cin_pad * cout_pad * itemsize)
    # Bigger targets on 128 MiB parts (v5e/v6e) amortize per-grid-step overhead.
    target = 2048 if cap >= (96 << 20) else 1024
    avail = max(budget - fixed, 64 * per_row)
    tt = min(target, avail // per_row, _round_up(T, 8))
    tt = max((tt // 8) * 8, _round_up(max_k, 8), 8)
    return int(tt)


# ----------------------------------------------------------------------------
# Pallas kernel: one aggregator layer, one (batch, time-tile) grid step.
# ----------------------------------------------------------------------------
def _agg_layer_kernel(x_ref, w_ref, b_ref, g_ref, bt_ref, *rest,
                      k, tile_t, pad, cout_real, residual_scale, has_rproj):
    # x_ref  : (1, Tt, Cin_pad)            current time tile of x (native dtype)
    # w_ref  : (k, Cin_pad, Cout_pad)      conv weight, one tap per leading index
    # b_ref  : (1, Cout_pad)   f32         conv bias  (zero in padded channels)
    # g_ref  : (1, Cout_pad)   f32         ln gamma * sqrt(residual_scale)
    # bt_ref : (1, Cout_pad)   f32         ln beta  * sqrt(residual_scale)
    # [rp_ref]: (Cin_pad, Cout_pad)        1x1 residual proj * scale (if has_rproj)
    # o_ref  : (1, Tt, Cout_pad)
    # [win_ref]: (pad + Tt, Cin_pad)       persistent window scratch (only if k > 1)
    i = 0
    rp_ref = None
    if has_rproj:
        rp_ref = rest[i]
        i += 1
    o_ref = rest[i]
    i += 1
    win_ref = rest[i] if k > 1 else None

    t = pl.program_id(1)
    x_tile = x_ref[0]                                   # (Tt, Cin_pad), native dtype

    if k > 1:
        # Causal halo: the first `pad` window rows hold the previous tile's last
        # `pad` rows (zeros for the first tile of each batch element). Correct
        # only because the time axis is iterated sequentially ("arbitrary") and
        # the scratch is per-core.
        @pl.when(t == 0)
        def _():
            win_ref[0:pad, :] = jnp.zeros((pad, win_ref.shape[1]), win_ref.dtype)

        @pl.when(t > 0)
        def _():
            win_ref[0:pad, :] = win_ref[tile_t:tile_t + pad, :]

        win_ref[pad:pad + tile_t, :] = x_tile

        # k accumulating MXU dots over shifted static windows — no (Tt, k*Cin)
        # concatenate temp (saves VMEM + vld/vst traffic, same MAC count).
        acc = jnp.dot(win_ref[0:tile_t, :], w_ref[0],
                      preferred_element_type=jnp.float32)
        for j in range(1, k):
            acc = acc + jnp.dot(win_ref[j:j + tile_t, :], w_ref[j],
                                preferred_element_type=jnp.float32)
    else:
        acc = jnp.dot(x_tile, w_ref[0], preferred_element_type=jnp.float32)

    acc = acc + b_ref[...]                               # (Tt, Cout_pad), f32

    # Dropout(p=0)/eval -> identity.
    # Fp32LayerNorm over the channel axis, single-pass stats.
    # Padded channels contribute exactly 0 to both sums; divide by real Cout.
    inv_c = 1.0 / float(cout_real)
    s1 = jnp.sum(acc, axis=-1, keepdims=True)
    s2 = jnp.sum(acc * acc, axis=-1, keepdims=True)
    mean = s1 * inv_c
    var = jnp.maximum(s2 * inv_c - mean * mean, 0.0)
    y = (acc - mean) * lax.rsqrt(var + LN_EPS)
    # gamma/beta already carry sqrt(residual_scale); ReLU commutes with it (>0).
    y = y * g_ref[...] + bt_ref[...]
    y = jnp.maximum(y, 0.0)                              # activation = ReLU

    # skip connection (+ optional 1x1-conv projection, already scale-folded)
    if has_rproj:
        res = jnp.dot(x_tile, rp_ref[...], preferred_element_type=jnp.float32)
    else:
        res = x_tile.astype(jnp.float32) * residual_scale
    o_ref[0] = (y + res).astype(o_ref.dtype)


# ----------------------------------------------------------------------------
# Wrapper: one layer.  x: (N, T, Cin_pad) -> (N, T, Cout_pad)
# ----------------------------------------------------------------------------
def conv_agg_layer(x, params, *, k, stride, residual_scale, time_tile):
    assert stride == 1  # TODO(synk): strided conv aggregator layers not implemented.
    N, T, cin_pad = x.shape
    dtype = x.dtype
    itemsize = jnp.dtype(dtype).itemsize

    W = params["w"]                                # (k, Cin_real, Cout_real)
    cin_real, cout_real = W.shape[1], W.shape[2]
    assert cin_pad == _round_up(cin_real, LANE)
    cout_pad = _round_up(cout_real, LANE)

    # causal left pad length (ZeroPad1d(ka + kb, 0)); equals k-1 for stride 1
    ka = k // 2
    kb = ka - 1 if k % 2 == 0 else ka
    pad = ka + kb

    Tt = time_tile
    assert T % Tt == 0, "wrapper must pad T to a tile multiple"
    assert Tt >= max(pad, 1)
    nT = T // Tt

    rp = params.get("rproj")
    has_rproj = rp is not None
    if not has_rproj:
        # identity skip path requires matching channel counts (the module always
        # inserts a 1x1 projection whenever in_d != dim)
        assert cin_real == cout_real and cin_pad == cout_pad

    # --- pad parameters once at the module boundary (lane alignment) ---------
    # sqrt(residual_scale) (>0) is folded into gamma/beta and rproj so the
    # epilogue has no extra full-tile multiply (identity residual keeps one).
    w = jnp.pad(W.astype(dtype),
                ((0, 0), (0, cin_pad - cin_real), (0, cout_pad - cout_real)))

    def _vec(v):
        return jnp.pad(v.astype(jnp.float32),
                       (0, cout_pad - cout_real)).reshape(1, cout_pad)

    b = _vec(params["b"])
    g = _vec(params["gamma"] * residual_scale)
    bt = _vec(params["beta"] * residual_scale)

    inputs = [x, w, b, g, bt]
    in_specs = [
        pl.BlockSpec((1, Tt, cin_pad), lambda n, t: (n, t, 0)),   # x tile
        _const_spec((k, cin_pad, cout_pad)),                      # conv weight
        _const_spec((1, cout_pad)),                               # conv bias
        _const_spec((1, cout_pad)),                               # ln gamma * scale
        _const_spec((1, cout_pad)),                               # ln beta  * scale
    ]
    if has_rproj:
        rp_p = jnp.pad((rp.astype(jnp.float32) * residual_scale).astype(dtype),
                       ((0, cin_pad - cin_real), (0, cout_pad - cout_real)))
        inputs.append(rp_p)
        in_specs.append(_const_spec((cin_pad, cout_pad)))

    scratch_shapes = []
    if k > 1:
        scratch_shapes.append(pltpu.VMEM((pad + Tt, cin_pad), dtype))

    kernel = functools.partial(
        _agg_layer_kernel, k=k, tile_t=Tt, pad=pad, cout_real=cout_real,
        residual_scale=residual_scale, has_rproj=has_rproj)

    # advisory cost estimate for the XLA scheduler
    flops = 2 * N * T * k * cin_pad * cout_pad
    if has_rproj:
        flops += 2 * N * T * cin_pad * cout_pad
    bytes_accessed = int(
        N * T * cin_pad * itemsize + N * T * cout_pad * itemsize
        + k * cin_pad * cout_pad * itemsize + 3 * cout_pad * 4
        + (cin_pad * cout_pad * itemsize if has_rproj else 0))
    cost = pl.CostEstimate(flops=int(flops), transcendentals=int(N * T),
                           bytes_accessed=bytes_accessed)

    # generation-aware VMEM budget (v7x 64 MiB vs v5e/v6e 128 MiB)
    weight_bufs = 1 if _single_buffer_ok() else 2
    tile_bytes = (
        2 * Tt * cin_pad * itemsize                       # x double-buffer
        + 2 * Tt * cout_pad * itemsize                    # out double-buffer
        + (pad + Tt) * cin_pad * itemsize                 # causal window scratch
        + weight_bufs * k * cin_pad * cout_pad * itemsize
        + (weight_bufs * cin_pad * cout_pad * itemsize if has_rproj else 0)
        + 6 * Tt * cout_pad * 4)                          # f32 temporaries
    vmem_cap = _vmem_capacity_bytes()
    vmem_limit = min(max(2 * tile_bytes, 32 << 20), int(0.75 * vmem_cap))
    vmem_limit = int(min(max(vmem_limit, int(1.25 * tile_bytes)),
                         int(0.95 * vmem_cap)))

    return pl.pallas_call(
        kernel,
        out_shape=jax.ShapeDtypeStruct((N, T, cout_pad), dtype),
        grid_spec=pltpu.PrefetchScalarGridSpec(
            num_scalar_prefetch=0,
            grid=(N, nT),
            in_specs=in_specs,
            out_specs=pl.BlockSpec((1, Tt, cout_pad), lambda n, t: (n, t, 0)),
            scratch_shapes=scratch_shapes,
        ),
        compiler_params=pltpu.CompilerParams(
            # NOTE: the time axis MUST stay "arbitrary" (sequential, per-core) —
            # the causal halo is carried in VMEM scratch across time tiles.
            dimension_semantics=("parallel", "arbitrary"),
            vmem_limit_bytes=vmem_limit),
        cost_estimate=cost,
    )(*inputs)


# ----------------------------------------------------------------------------
# Full ConvAggegator forward (skip_connections=True, zero_pad=True,
# conv_bias=True, affine layer-norm, activation=ReLU, dropout=0.0/eval)
# ----------------------------------------------------------------------------
def conv_aggregator_forward(x_nct, layer_params, conv_layers, residual_scale,
                            time_tile=None):
    N, c_real, T = x_nct.shape
    x = jnp.transpose(x_nct, (0, 2, 1))            # (N, T, C)
    c_pad = _round_up(c_real, LANE)
    if c_pad != c_real:                            # lane-align channels once
        x = jnp.pad(x, ((0, 0), (0, 0), (0, c_pad - c_real)))

    # per-layer padded channel dims (for VMEM-aware tile choice)
    itemsize = jnp.dtype(x.dtype).itemsize
    dims, in_d, max_k = [], c_real, 1
    for dim, k, _stride in conv_layers:
        dims.append((_round_up(in_d, LANE), _round_up(dim, LANE)))
        max_k = max(max_k, k)
        in_d = dim

    Tt = time_tile if time_tile is not None else _choose_time_tile(
        T, dims, itemsize, max_k)
    T_pad = _round_up(T, Tt)
    if T_pad != T:
        # Causal conv: zero rows appended at the end cannot influence any output
        # at t < T in this or any later layer; trimmed below.
        x = jnp.pad(x, ((0, 0), (0, T_pad - T), (0, 0)))

    scale = math.sqrt(residual_scale)
    for params, (_dim, k, stride) in zip(layer_params, conv_layers):
        x = conv_agg_layer(x, params, k=k, stride=stride,
                           residual_scale=scale, time_tile=Tt)
    x = x[:, :T, :conv_layers[-1][0]]              # drop time + channel padding
    return jnp.transpose(x, (0, 2, 1))             # back to (N, C, T)


# ----------------------------------------------------------------------------
# Pure-JAX reference (unpadded) for correctness checking
# ----------------------------------------------------------------------------
def _ref_layer(x, params, k, scale):
    T = x.shape[1]
    ka = k // 2
    kb = ka - 1 if k % 2 == 0 else ka
    xp = jnp.pad(x, ((0, 0), (ka + kb, 0), (0, 0)))
    taps = jnp.stack([xp[:, j:j + T, :] for j in range(k)], axis=2)   # (N,T,k,Cin)
    y = jnp.einsum("ntjc,jcd->ntd", taps, params["w"]) + params["b"]
    mean = y.mean(-1, keepdims=True)
    var = ((y - mean) ** 2).mean(-1, keepdims=True)
    y = (y - mean) / jnp.sqrt(var + LN_EPS) * params["gamma"] + params["beta"]
    y = jnp.maximum(y, 0.0)
    res = x if params.get("rproj") is None else jnp.einsum("ntc,cd->ntd", x, params["rproj"])
    return (y + res) * scale


def _ref_forward(x_nct, layer_params, conv_layers, residual_scale):
    x = jnp.transpose(x_nct, (0, 2, 1))
    scale = math.sqrt(residual_scale)
    for params, (_dim, k, _s) in zip(layer_params, conv_layers):
        x = _ref_layer(x, params, k, scale)
    return jnp.transpose(x, (0, 2, 1))


# ----------------------------------------------------------------------------
# Deterministic parameter init + demo
# ----------------------------------------------------------------------------
def init_params(key, embed, conv_layers, skip_connections=True):
    params = []
    in_d = embed
    for dim, k, _stride in conv_layers:
        key, kw, kb, krp = jax.random.split(key, 4)
        fan_in = in_d * k
        p = {
            "w": jax.random.normal(kw, (k, in_d, dim), jnp.float32) / math.sqrt(fan_in),
            "b": jax.random.normal(kb, (dim,), jnp.float32) * 0.01,
            "gamma": jnp.ones((dim,), jnp.float32),
            "beta": jnp.zeros((dim,), jnp.float32),
        }
        if in_d != dim and skip_connections:
            p["rproj"] = jax.random.normal(krp, (in_d, dim), jnp.float32) / math.sqrt(in_d)
        params.append(p)
        in_d = dim
    return params


if __name__ == "__main__":
    # Small config consistent with the module: (dim, kernel, stride) per layer.
    embed = 16
    conv_layers = [(32, 3, 1), (32, 2, 1)]
    residual_scale = 0.5
    N, T = 2, 60            # T deliberately NOT a tile multiple: exercises time padding
    time_tile = 16          # small tile so the causal carry across tiles is exercised

    key = jax.random.PRNGKey(0)
    kx, kp = jax.random.split(key)
    x = jax.random.normal(kx, (N, embed, T), jnp.float32)   # PyTorch (N, C, T) input

    layer_params = init_params(kp, embed, conv_layers)

    out = conv_aggregator_forward(x, layer_params, conv_layers, residual_scale,
                                  time_tile=time_tile)
    out = jax.block_until_ready(out)

    ref = _ref_forward(x, layer_params, conv_layers, residual_scale)
    assert out.shape == (N, conv_layers[-1][0], T)
    assert jnp.allclose(out, ref, rtol=1e-4, atol=1e-4), "mismatch vs. reference"

    # also exercise the VMEM-aware automatic tile-size path
    out2 = jax.block_until_ready(
        conv_aggregator_forward(x, layer_params, conv_layers, residual_scale))
    assert jnp.allclose(out2, ref, rtol=1e-4, atol=1e-4), "mismatch (auto tile)"

    print("KERNEL_OK")
</pallas_src>

<mosaic_0001>
module attributes {stable_mosaic.version = 11 : i64} {
  func.func @_k(%arg0: i32, %arg1: memref<8x128xf32, #tpu.memory_space<vmem>>, %arg2: memref<8x128xf32, #tpu.memory_space<vmem>>) attributes {dimension_semantics = [#tpu.dimension_semantics<arbitrary>], iteration_bounds = array<i64: 2>, scalar_prefetch = 0 : i64, scratch_operands = 0 : i64, tpu.core_type = #tpu.core_type<tc>, window_params = [{pipeline_mode = #tpu.pipeline_mode<synchronous>, transform_indices = @transform_0, window_bounds = array<i64: 8, 128>}, {pipeline_mode = #tpu.pipeline_mode<synchronous>, transform_indices = @transform_1, window_bounds = array<i64: 8, 128>}]} {
    %c0 = arith.constant 0 : index
    %c0_0 = arith.constant 0 : index
    %0 = vector.load %arg1[%c0, %c0_0] : memref<8x128xf32, #tpu.memory_space<vmem>>, vector<8x128xf32>
    %cst = arith.constant 1.000000e+00 : f32
    %1 = vector.broadcast %cst : f32 to vector<8x128xf32>
    %2 = arith.addf %0, %1 : vector<8x128xf32>
    %c0_1 = arith.constant 0 : index
    %c0_2 = arith.constant 0 : index
    %3 = vector.load %arg2[%c0_1, %c0_2] : memref<8x128xf32, #tpu.memory_space<vmem>>, vector<8x128xf32>
    tpu.vector_store %arg2[%c0_1, %c0_2], %2 {strides = array<i32>} : memref<8x128xf32, #tpu.memory_space<vmem>>, vector<8x128xf32>,
    return
  }
  func.func @transform_0(%arg0: i32) -> (i32, i32) {
    %c0_i32 = arith.constant 0 : i32
    %c0_i32_0 = arith.constant 0 : i32
    %c0_i32_1 = arith.constant 0 : i32
    return %c0_i32, %c0_i32_0 : i32, i32
  }
  func.func @transform_1(%arg0: i32) -> (i32, i32) {
    %c0_i32 = arith.constant 0 : i32
    %c0_i32_0 = arith.constant 0 : i32
    %c0_i32_1 = arith.constant 0 : i32
    return %c0_i32, %c0_i32_0 : i32, i32
  }
}

module attributes {stable_mosaic.version = 11 : i64} {
  func.func @_agg_layer_kernel(%arg0: i32, %arg1: i32, %arg2: memref<1x16x128xf32, #tpu.memory_space<vmem>>, %arg3: memref<3x128x128xf32, #tpu.memory_space<vmem>>, %arg4: memref<1x128xf32, #tpu.memory_space<vmem>>, %arg5: memref<1x128xf32, #tpu.memory_space<vmem>>, %arg6: memref<1x128xf32, #tpu.memory_space<vmem>>, %arg7: memref<128x128xf32, #tpu.memory_space<vmem>>, %arg8: memref<1x16x128xf32, #tpu.memory_space<vmem>>, %arg9: memref<18x128xf32, #tpu.memory_space<vmem>>) attributes {dimension_semantics = [#tpu.dimension_semantics<parallel>, #tpu.dimension_semantics<arbitrary>], iteration_bounds = array<i64: 2, 4>, scalar_prefetch = 0 : i64, scratch_operands = 1 : i64, tpu.core_type = #tpu.core_type<tc>, window_params = [{transform_indices = @transform_0, window_bounds = array<i64: 1, 16, 128>}, {pipeline_mode = #tpu.pipeline_mode<synchronous>, transform_indices = @transform_1, window_bounds = array<i64: 3, 128, 128>}, {pipeline_mode = #tpu.pipeline_mode<synchronous>, transform_indices = @transform_2, window_bounds = array<i64: 1, 128>}, {pipeline_mode = #tpu.pipeline_mode<synchronous>, transform_indices = @transform_3, window_bounds = array<i64: 1, 128>}, {pipeline_mode = #tpu.pipeline_mode<synchronous>, transform_indices = @transform_4, window_bounds = array<i64: 1, 128>}, {pipeline_mode = #tpu.pipeline_mode<synchronous>, transform_indices = @transform_5, window_bounds = array<i64: 128, 128>}, {transform_indices = @transform_6, window_bounds = array<i64: 1, 16, 128>}]} {
    %c0 = arith.constant 0 : index
    %c0_0 = arith.constant 0 : index
    %c0_1 = arith.constant 0 : index
    %0 = vector.load %arg2[%c0, %c0_0, %c0_1] : memref<1x16x128xf32, #tpu.memory_space<vmem>>, vector<1x16x128xf32>
    %1 = vector.shape_cast %0 : vector<1x16x128xf32> to vector<16x128xf32>
    %c0_i32 = arith.constant 0 : i32
    %2 = arith.cmpi eq, %arg1, %c0_i32 : i32
    %3 = arith.extui %2 : i1 to i32
    %c0_i32_2 = arith.constant 0 : i32
    %4 = arith.cmpi ne, %3, %c0_i32_2 : i32
    scf.if %4 {
      %cst_41 = arith.constant 0.000000e+00 : f32
      %60 = vector.broadcast %cst_41 : f32 to vector<2x128xf32>
      %c0_42 = arith.constant 0 : index
      %c0_43 = arith.constant 0 : index
      %61 = vector.load %arg9[%c0_42, %c0_43] : memref<18x128xf32, #tpu.memory_space<vmem>>, vector<2x128xf32>
      tpu.vector_store %arg9[%c0_42, %c0_43], %60 {strides = array<i32>} : memref<18x128xf32, #tpu.memory_space<vmem>>, vector<2x128xf32>,
    } else {
    }
    %c0_i32_3 = arith.constant 0 : i32
    %5 = arith.cmpi sgt, %arg1, %c0_i32_3 : i32
    %6 = arith.extui %5 : i1 to i32
    %c0_i32_4 = arith.constant 0 : i32
    %7 = arith.cmpi ne, %6, %c0_i32_4 : i32
    scf.if %7 {
      %c16 = arith.constant 16 : index
      %c0_41 = arith.constant 0 : index
      %60 = vector.load %arg9[%c16, %c0_41] : memref<18x128xf32, #tpu.memory_space<vmem>>, vector<2x128xf32>
      %c0_42 = arith.constant 0 : index
      %c0_43 = arith.constant 0 : index
      %61 = vector.load %arg9[%c0_42, %c0_43] : memref<18x128xf32, #tpu.memory_space<vmem>>, vector<2x128xf32>
      tpu.vector_store %arg9[%c0_42, %c0_43], %60 {strides = array<i32>} : memref<18x128xf32, #tpu.memory_space<vmem>>, vector<2x128xf32>,
    } else {
    }
    %c2 = arith.constant 2 : index
    %c0_5 = arith.constant 0 : index
    %8 = vector.load %arg9[%c2, %c0_5] : memref<18x128xf32, #tpu.memory_space<vmem>>, vector<16x128xf32>
    tpu.vector_store %arg9[%c2, %c0_5], %1 {strides = array<i32>} : memref<18x128xf32, #tpu.memory_space<vmem>>, vector<16x128xf32>,
    %c0_6 = arith.constant 0 : index
    %c0_7 = arith.constant 0 : index
    %9 = vector.load %arg9[%c0_6, %c0_7] : memref<18x128xf32, #tpu.memory_space<vmem>>, vector<16x128xf32>
    %c0_8 = arith.constant 0 : index
    %c0_9 = arith.constant 0 : index
    %c0_10 = arith.constant 0 : index
    %10 = vector.load %arg3[%c0_8, %c0_9, %c0_10] : memref<3x128x128xf32, #tpu.memory_space<vmem>>, vector<1x128x128xf32>
    %11 = vector.shape_cast %10 : vector<1x128x128xf32> to vector<128x128xf32>
    %cst = arith.constant dense<0.000000e+00> : vector<16x128xf32>
    %12 = tpu.matmul %9, %11, %cst {dimension_numbers = #tpu.dot_dimension_numbers<[1], [0], [0], [1], [0, 0, 1, 1], [], []>} : vector<16x128xf32>, vector<128x128xf32>, vector<16x128xf32> -> vector<16x128xf32>
    %c1 = arith.constant 1 : index
    %c0_11 = arith.constant 0 : index
    %13 = vector.load %arg9[%c1, %c0_11] : memref<18x128xf32, #tpu.memory_space<vmem>>, vector<16x128xf32>
    %c1_12 = arith.constant 1 : index
    %c0_13 = arith.constant 0 : index
    %c0_14 = arith.constant 0 : index
    %14 = vector.load %arg3[%c1_12, %c0_13, %c0_14] : memref<3x128x128xf32, #tpu.memory_space<vmem>>, vector<1x128x128xf32>
    %15 = vector.shape_cast %14 : vector<1x128x128xf32> to vector<128x128xf32>
    %cst_15 = arith.constant dense<0.000000e+00> : vector<16x128xf32>
    %16 = tpu.matmul %13, %15, %cst_15 {dimension_numbers = #tpu.dot_dimension_numbers<[1], [0], [0], [1], [0, 0, 1, 1], [], []>} : vector<16x128xf32>, vector<128x128xf32>, vector<16x128xf32> -> vector<16x128xf32>
    %17 = arith.addf %12, %16 : vector<16x128xf32>
    %c2_16 = arith.constant 2 : index
    %c0_17 = arith.constant 0 : index
    %18 = vector.load %arg9[%c2_16, %c0_17] : memref<18x128xf32, #tpu.memory_space<vmem>>, vector<16x128xf32>
    %c2_18 = arith.constant 2 : index
    %c0_19 = arith.constant 0 : index
    %c0_20 = arith.constant 0 : index
    %19 = vector.load %arg3[%c2_18, %c0_19, %c0_20] : memref<3x128x128xf32, #tpu.memory_space<vmem>>, vector<1x128x128xf32>
    %20 = vector.shape_cast %19 : vector<1x128x128xf32> to vector<128x128xf32>
    %cst_21 = arith.constant dense<0.000000e+00> : vector<16x128xf32>
    %21 = tpu.matmul %18, %20, %cst_21 {dimension_numbers = #tpu.dot_dimension_numbers<[1], [0], [0], [1], [0, 0, 1, 1], [], []>} : vector<16x128xf32>, vector<128x128xf32>, vector<16x128xf32> -> vector<16x128xf32>
    %22 = arith.addf %17, %21 : vector<16x128xf32>
    %c0_22 = arith.constant 0 : index
    %c0_23 = arith.constant 0 : index
    %23 = vector.load %arg4[%c0_22, %c0_23] : memref<1x128xf32, #tpu.memory_space<vmem>>, vector<1x128xf32>
    %24 = vector.broadcast %23 : vector<1x128xf32> to vector<16x128xf32>
    %25 = arith.addf %22, %24 : vector<16x128xf32>
    %cst_24 = arith.constant dense<0.000000e+00> : vector<16xf32>
    %26 = vector.multi_reduction <add>, %25, %cst_24 [1] : vector<16x128xf32> to vector<16xf32>
    %27 = vector.shape_cast %26 : vector<16xf32> to vector<16x1xf32>
    %28 = arith.mulf %25, %25 : vector<16x128xf32>
    %cst_25 = arith.constant dense<0.000000e+00> : vector<16xf32>
    %29 = vector.multi_reduction <add>, %28, %cst_25 [1] : vector<16x128xf32> to vector<16xf32>
    %30 = vector.shape_cast %29 : vector<16xf32> to vector<16x1xf32>
    %cst_26 = arith.constant 3.125000e-02 : f32
    %31 = vector.broadcast %cst_26 : f32 to vector<16x1xf32>
    %32 = arith.mulf %27, %31 : vector<16x1xf32>
    %cst_27 = arith.constant 3.125000e-02 : f32
    %33 = vector.broadcast %cst_27 : f32 to vector<16x1xf32>
    %34 = arith.mulf %30, %33 : vector<16x1xf32>
    %35 = arith.mulf %32, %32 : vector<16x1xf32>
    %36 = arith.subf %34, %35 : vector<16x1xf32>
    %cst_28 = arith.constant 0.000000e+00 : f32
    %37 = vector.broadcast %cst_28 : f32 to vector<16x1xf32>
    %38 = arith.maximumf %36, %37 : vector<16x1xf32>
    %39 = vector.broadcast %32 : vector<16x1xf32> to vector<16x128xf32>
    %40 = arith.subf %25, %39 : vector<16x128xf32>
    %cst_29 = arith.constant 9.99999974E-6 : f32
    %41 = vector.broadcast %cst_29 : f32 to vector<16x1xf32>
    %42 = arith.addf %38, %41 : vector<16x1xf32>
    %43 = math.rsqrt %42 : vector<16x1xf32>
    %44 = vector.broadcast %43 : vector<16x1xf32> to vector<16x128xf32>
    %45 = arith.mulf %40, %44 : vector<16x128xf32>
    %c0_30 = arith.constant 0 : index
    %c0_31 = arith.constant 0 : index
    %46 = vector.load %arg5[%c0_30, %c0_31] : memref<1x128xf32, #tpu.memory_space<vmem>>, vector<1x128xf32>
    %47 = vector.broadcast %46 : vector<1x128xf32> to vector<16x128xf32>
    %48 = arith.mulf %45, %47 : vector<16x128xf32>
    %c0_32 = arith.constant 0 : index
    %c0_33 = arith.constant 0 : index
    %49 = vector.load %arg6[%c0_32, %c0_33] : memref<1x128xf32, #tpu.memory_space<vmem>>, vector<1x128xf32>
    %50 = vector.broadcast %49 : vector<1x128xf32> to vector<16x128xf32>
    %51 = arith.addf %48, %50 : vector<16x128xf32>
    %cst_34 = arith.constant 0.000000e+00 : f32
    %52 = vector.broadcast %cst_34 : f32 to vector<16x128xf32>
    %53 = arith.maximumf %51, %52 : vector<16x128xf32>
    %c0_35 = arith.constant 0 : index
    %c0_36 = arith.constant 0 : index
    %54 = vector.load %arg7[%c0_35, %c0_36] : memref<128x128xf32, #tpu.memory_space<vmem>>, vector<128x128xf32>
    %cst_37 = arith.constant dense<0.000000e+00> : vector<16x128xf32>
    %55 = tpu.matmul %1, %54, %cst_37 {dimension_numbers = #tpu.dot_dimension_numbers<[1], [0], [0], [1], [0, 0, 1, 1], [], []>} : vector<16x128xf32>, vector<128x128xf32>, vector<16x128xf32> -> vector<16x128xf32>
    %56 = arith.addf %53, %55 : vector<16x128xf32>
    %c0_38 = arith.constant 0 : index
    %c0_39 = arith.constant 0 : index
    %c0_40 = arith.constant 0 : index
    %57 = vector.load %arg8[%c0_38, %c0_39, %c0_40] : memref<1x16x128xf32, #tpu.memory_space<vmem>>, vector<1x16x128xf32>
    %58 = vector.shape_cast %57 : vector<1x16x128xf32> to vector<16x128xf32>
    %59 = vector.shape_cast %56 : vector<16x128xf32> to vector<1x16x128xf32>
    tpu.vector_store %arg8[%c0_38, %c0_39, %c0_40], %59 {strides = array<i32>} : memref<1x16x128xf32, #tpu.memory_space<vmem>>, vector<1x16x128xf32>,
    return
  }
  func.func @transform_0(%arg0: i32, %arg1: i32) -> (i32, i32, i32) {
    %c0_i32 = arith.constant 0 : i32
    %c0_i32_0 = arith.constant 0 : i32
    return %arg0, %arg1, %c0_i32 : i32, i32, i32
  }
  func.func @transform_1(%arg0: i32, %arg1: i32) -> (i32, i32, i32) {
    %c0_i32 = arith.constant 0 : i32
    %c0_i32_0 = arith.constant 0 : i32
    %c0_i32_1 = arith.constant 0 : i32
    %c0_i32_2 = arith.constant 0 : i32
    return %c0_i32, %c0_i32_0, %c0_i32_1 : i32, i32, i32
  }
  func.func @transform_2(%arg0: i32, %arg1: i32) -> (i32, i32) {
    %c0_i32 = arith.constant 0 : i32
    %c0_i32_0 = arith.constant 0 : i32
    %c0_i32_1 = arith.constant 0 : i32
    return %c0_i32, %c0_i32_0 : i32, i32
  }
  func.func @transform_3(%arg0: i32, %arg1: i32) -> (i32, i32) {
    %c0_i32 = arith.constant 0 : i32
    %c0_i32_0 = arith.constant 0 : i32
    %c0_i32_1 = arith.constant 0 : i32
    return %c0_i32, %c0_i32_0 : i32, i32
  }
  func.func @transform_4(%arg0: i32, %arg1: i32) -> (i32, i32) {
    %c0_i32 = arith.constant 0 : i32
    %c0_i32_0 = arith.constant 0 : i32
    %c0_i32_1 = arith.constant 0 : i32
    return %c0_i32, %c0_i32_0 : i32, i32
  }
  func.func @transform_5(%arg0: i32, %arg1: i32) -> (i32, i32) {
    %c0_i32 = arith.constant 0 : i32
    %c0_i32_0 = arith.constant 0 : i32
    %c0_i32_1 = arith.constant 0 : i32
    return %c0_i32, %c0_i32_0 : i32, i32
  }
  func.func @transform_6(%arg0: i32, %arg1: i32) -> (i32, i32, i32) {
    %c0_i32 = arith.constant 0 : i32
    %c0_i32_0 = arith.constant 0 : i32
    return %arg0, %arg1, %c0_i32 : i32, i32, i32
  }
}

</mosaic_0001>

<bundles_post_ra>
// kernel: tpu_custom_call.1
= control target key start
LH: loop header
LB: loop body
LE: loop exit
PB: predicated region body
PF: predicated region fallthrough
CT: control target
= control target key end

     0   :  { %6 = vsyncpa [#allocation3], 0  ;;  %s287_s0 = inlined_call_operand.hbm [shape: f32[8,128], index: 0, kind: input, shape index: {}]   ;;  %s288_s1 = inlined_call_operand.hbm [shape: f32[8,128], index: 1, kind: output, shape index: {}]  }
   0x1   :  { %7 = vsyncpa [#allocation4], 0  ;;  %s270_s6 = smov 0  }
   0x2 LB: > { %s149_s7 = sadd.s32 4294967295, %s256_s6   ;;  %p150_p0 = scmp.ge.s32.totalorder %s256_s6, 1  ;;  %s256_s6 = sphi %s270_s6, %s13_s6  }
   0x3   : > { %p60_p1 = scmp.lt.s32.totalorder %s256_s6, 3  ;;  %s72_s10 = sshll.u32 %s287_s0, 4  ;;  %s73_s10 = int_to_ptr.hbm [resolvable:$true] %s72_s10 }
   0x4   : > { %p170_p3 = scmp.eq.s32.totalorder %s149_s7, 0  ;;  %s258_s11 = smov [#allocation2]  }
   0x5   : > { %p61_p2 = pnand %p150_p0, %p60_p1  ;;  %s74_s12 = sshll.u32 %s258_s11, 4  ;;  %s75_s12 = int_to_ptr.vmem [resolvable:$true] %s74_s12 }
   0x7   : > { %p166_p4 = pneg %p61_p2  ;;  %87 = sbr.rel (%p61_p2) target bundleno = 20 (0x14), region = 24 }
   0x9   : > { %p167_p5 = pnand %p170_p3, %p166_p4 }
   0xb   : > { %169 = dma.hbm_to_vmem [thread:$0]  (!%p167_p5), %s73_s10, 128, %s75_s12, [#allocation3]  }
   0xc   : > { %247 = dma.done.wait (%p170_p3), [#allocation3], 128  }
   0xd   : > { %249 = vsyncadd (%p170_p3), [#allocation3], 4294967168  ;;  %s259_s13 = smov [#allocation5]   ;;  %s109_s17 = sshll.u32 %s288_s1, 4  ;;  %v98_v0 = vld [vmem:[#allocation2] sm:$0xff]  ;;  %s110_s17 = int_to_ptr.hbm [resolvable:$true] %s109_s17 }
   0xe   : > { %s107_s14 = sshll.u32 %s259_s13, 4  ;;  %p172_p6 = scmp.eq.s32.totalorder %s149_s7, 1  ;;  %v99_v1 = vadd.f32 1.0, %v98_v0  ;;  %s108_s14 = int_to_ptr.vmem [resolvable:$true] %s107_s14 }
  0x10   : > { %100 = vst [vmem:[#allocation5] sm:$0xff] %v99_v1 }
  0x11   : > { %163 = dma.vmem_to_hbm [thread:$0]  (%p172_p6), %s108_s14, 128, %s110_s17, [#allocation4]  }
  0x12   : > { %251 = dma.done.wait (%p172_p6), [#allocation4], 128  }
  0x13   : > { %253 = vsyncadd (%p172_p6), [#allocation4], 4294967168 }
  0x14 PF: > { %s13_s6 = sadd.s32 1, %s256_s6  }
  0x15   : > { %p10_p7 = scmp.ge.s32.totalorder %s13_s6, 4  }
  0x17   :  { %12 = sbr.rel (!%p10_p7) target bundleno = 2 (0x2), region = 53 }
  0x1c   :  { %123 = vsyncpa [#allocation3], 1 }
  0x1d   :  { %125 = vsyncpa [#allocation3 + $0x1], 1 }
  0x1e   :  { %126 = vsyncpa [#allocation4], 1 }
  0x1f   :  { %128 = vsyncpa [#allocation4 + $0x1], 1 }

// kernel: tpu_custom_call.1
= control target key start
LH: loop header
LB: loop body
LE: loop exit
PB: predicated region body
PF: predicated region fallthrough
CT: control target
= control target key end

     0   :  { %s1284_s0 = inlined_call_operand.hbm [shape: f32[2,64,128], index: 0, kind: input, shape index: {}]   ;;  %s1285_s1 = inlined_call_operand.hbm [shape: f32[3,128,128], index: 1, kind: input, shape index: {}]   ;;  %s1286_s2 = inlined_call_operand.vmem [shape: f32[1,128], index: 2, kind: input, shape index: {}]   ;;  %s1287_s3 = inlined_call_operand.vmem [shape: f32[1,128], index: 3, kind: input, shape index: {}]   ;;  %s1288_s4 = inlined_call_operand.vmem [shape: f32[1,128], index: 4, kind: input, shape index: {}]   ;;  %s1289_s5 = inlined_call_operand.hbm [shape: f32[128,128], index: 5, kind: input, shape index: {}]   ;;  %s1290_s6 = inlined_call_operand.hbm [shape: f32[2,64,128], index: 6, kind: output, shape index: {}]  }
   0x1   :  { %1299 = sst [smem:[#allocation17_spill]] %s1285_s1 }
   0x2   :  { %1300 = sst [smem:[#allocation18_spill]] %s1287_s3 }
   0x3   :  { %1301 = sst [smem:[#allocation19_spill]] %s1288_s4 }
   0x4   :  { %1302 = sst [smem:[#allocation20_spill]] %s1289_s5 }
   0x5   :  { %1303 = sst [smem:[#allocation21_spill]] %s1290_s6 }
   0x6   :  { %11 = vsyncpa [#allocation4], 0 }
   0x7   :  { %13 = vsyncpa [#allocation4 + $0x1], 0 }
   0x8   :  { %14 = vsyncpa [#allocation7], 0 }
   0x9   :  { %15 = vsyncpa [#allocation5], 0 }
   0xa   :  { %17 = vsyncpa [#allocation5 + $0x1], 0  ;;  %s1073_s21 = smov 0   ;;  %s1075_s22 = smov 0  }
   0xb   :  { %s1077_s23 = smov 0   ;;  %s1079_s24 = smov 0  }
   0xc   :  { %s1081_s25 = smov 0   ;;  %s1083_s26 = smov 0  }
   0xd   :  { %s1085_s27 = smov 0   ;;  %s1087_s28 = smov 0  }
   0xe LB: > { %1304 = sst [smem:[#allocation13_spill]] %s1001_s21  ;;  %s703_s29 = sadd.s32 4294967295, %s1029_s28   ;;  %s1029_s28 = sphi %s1087_s28, %s23_s28   ;;  %s1025_s27 = sphi %s1085_s27, %s1332_s27   ;;  %s1021_s26 = sphi %s1083_s26, %s1331_s26   ;;  %s1017_s25 = sphi %s1081_s25, %s1330_s25   ;;  %s1013_s24 = sphi %s1079_s24, %s1329_s24   ;;  %s1009_s23 = sphi %s1077_s23, %s1328_s23   ;;  %s1005_s22 = sphi %s1075_s22, %s1327_s22   ;;  %s1001_s21 = sphi %s1073_s21, %s1326_s21  }
   0xf   : > { %s704_s30 = sadd.s32 4294967294, %s1029_s28   ;;  %p57_p0 = scmp.ne.s32.totalorder %s1005_s22, %s1001_s21 }
  0x10   : > { %p1117_p1 = scmp.eq.s32.totalorder %s703_s29, 0  ;;  %p1121_p2 = scmp.eq.s32.totalorder %s703_s29, 7 }
  0x11   : > { %p194_p3 = scmp.eq.s32.totalorder %s704_s30, 7  ;;  %p705_p5 = scmp.ge.s32.totalorder %s1029_s28, 1 }
  0x12   : > { %p1127_p4 = por %p1117_p1, %p57_p0  ;;  %p201_p7 = scmp.lt.s32.totalorder %s1029_s28, 9 }
  0x13   : > { %p1132_p6 = por %p194_p3, %p57_p0  ;;  %s1310_s1 = sld [smem:[#allocation17_spill]] }
  0x14   : > { %p1140_p8 = pnand %p705_p5, %p201_p7  ;;  %s1031_s15 = smov [#allocation6]  }
  0x15   : > { %s1308_s10 = scalar_select %p1132_p6, 1, 0 }
  0x16   : > { %p738_p9 = pneg %p1140_p8  ;;  %s214_s16 = sshll.u32 %s1031_s15, 4  ;;  %s215_s16 = int_to_ptr.vmem [resolvable:$true] %s214_s16 }
  0x17   : > { %1309 = sst [smem:[#allocation14_spill]] %s1308_s10  ;;  %s1291_s20 = smov 128  }
  0x18   : > { %p739_p10 = pnand %p738_p9, %p1117_p1  ;;  %s1312_s5 = sld [smem:[#allocation20_spill]] }
  0x19   : > { %s212_s13 = sshll.u32 %s1310_s1, 4  ;;  %s1292_s29 = smov 8   ;;  %s213_s13 = int_to_ptr.hbm [resolvable:$true] %s212_s13 }
  0x1a   : > { %741 = dma.hbm_to_vmem [thread:$0]  (!%p739_p10), %s213_s13, 6144, %s215_s16, [#allocation7], %s1291_s20, %s1291_s20, %s1292_s29  }
  0x1b   : > { %s1034_s30 = smov [#allocation8]   ;;  %s32_s12 = sadd.s32 1, %s1021_s26 }
  0x1c   : > { %s237_s11 = sshll.u32 %s1034_s30, 4  ;;  %s35_s15 = sadd.s32 1, %s1025_s27  ;;  %s238_s11 = int_to_ptr.vmem [resolvable:$true] %s237_s11 }
  0x1d   : > { %p33_p11 = scmp.ge.s32.totalorder %s32_s12, 4  ;;  %s44_s17 = sadd.s32 1, %s1009_s23 }
  0x1e   : > { %s235_s19 = sshll.u32 %s1312_s5, 4  ;;  %p51_p12 = scmp.ne.s32.totalorder %s1009_s23, %s1005_s22  ;;  %s236_s19 = int_to_ptr.hbm [resolvable:$true] %s235_s19 }
  0x1f   : > { %744 = dma.hbm_to_vmem [thread:$0]  (!%p739_p10), %s236_s19, 2048, %s238_s11, [#allocation7], %s1291_s20, %s1291_s20, %s1292_s29  }
  0x20   : > { %p52_p13 = scmp.eq.s32.totalorder %s1029_s28, 0  ;;  %s1334_s12 = smov (%p33_p11, %s32_s12), 0 }
  0x21   : > { %1313 = sst [smem:[#allocation15_spill]] %s1334_s12  ;;  %s1336_s15 = smov (!%p33_p11, %s35_s15), %s1025_s27 }
  0x22   : > { %s40_s13 = ssub.s32 %s1021_s26, %s1334_s12  ;;  %p1168_p0 = por %p52_p13, %p51_p12 }
  0x23   : > { %p37_p3 = scmp.ge.s32.totalorder %s1336_s15, 2  ;;  %p1174_p5 = por %p1121_p2, %p51_p12 }
  0x24   : > { %p755_p7 = scmp.lt.s32.totalorder %s1029_s28, 8  ;;  %s251_s19 = sand.u32 1, %s1009_s23  }
  0x25   : > { %s1315_s18 = scalar_select %p1174_p5, 1, 0 }
  0x26   : > { %s1338_s15 = smov (%p37_p3, %s1336_s15), 0  ;;  %s709_s30 = sshll.u32 %s251_s19, 4 }
  0x27   : > { %1316 = sst [smem:[#allocation16_spill]] %s1315_s18  ;;  %s39_s11 = ssub.s32 %s1025_s27, %s1338_s15 }
  0x28   : > { %s41_s20 = sor.u32 %s40_s13, %s39_s11  ;;  %s710_s29 = sshll.u32 %s1021_s26, 1 }
  0x29   : > { %p42_p9 = scmp.eq.s32.totalorder %s41_s20, 0  ;;  %s711_s1 = sshll.u32 %s1025_s27, 3 }
  0x2a   : > { %s260_s5 = sadd.s32 %s711_s1, %s710_s29  ;;  %s255_s12 = scalar_lea.vmem [#allocation3], %s709_s30 }
  0x2b   : > { %s265_s8 = sshll.u32 %s255_s12, 4  ;;  %s712_s21 = sshll.u32 %s260_s5, 3  ;;  %s266_s8 = int_to_ptr.vmem [resolvable:$true] %s265_s8 }
  0x2c   : > { %s1187_s10 = scalar_select %p42_p9, %s1009_s23, %s44_s17  }
  0x2d   : > { %s262_s4 = scalar_lea.hbm %s1284_s0, %s712_s21  ;;  %p746_p2 = pnand %p755_p7, %p1168_p0 }
  0x2e   : > { %s263_s3 = sshll.u32 %s262_s4, 4  ;;  %s252_s13 = scalar_lea.sflag [#allocation4], %s251_s19  ;;  %s264_s3 = int_to_ptr.hbm [resolvable:$true] %s263_s3 }
  0x2f   : > { %s1317_s11 = smov 8   ;;  %s1318_s20 = smov 128  }
  0x30   : > { %748 = dma.hbm_to_vmem [thread:$0]  (!%p746_p2), %s264_s3, 256, %s266_s8, %s252_s13, %s1318_s20, %s1318_s20, %s1317_s11  }
  0x31   : > { %277 = sbr.rel (%p1140_p8) target bundleno = 409 (0x199), region = 44  ;;  %s1202_s1 = sand.u32 (!%p1140_p8), 1, %s1005_s22  }
  0x32   : > { %s714_s5 = sshll.u32 (!%p1140_p8), %s1202_s1, 4  ;;  %s280_s6 = scalar_lea.sflag (!%p1140_p8), [#allocation4], %s1202_s1 }
  0x33   : > { %s283_s21 = scalar_lea.vmem (!%p1140_p8), [#allocation3], %s714_s5 }
  0x36   : > { %988 = dma.done.wait (%p1127_p4), %s280_s6, 256  }
  0x37   : > { %990 = vsyncadd (%p1127_p4), %s280_s6, 4294967040 }
  0x38   : > { %992 = dma.done.wait (%p1117_p1), [#allocation7], 8192  }
  0x39   : > { %994 = vsyncadd (%p1117_p1), [#allocation7], 4294959104  ;;  %v1214_v0 = vld [vmem:[%s283_s21] sm:$0xff]  ;;  %v1216_v1 = vld [vmem:[%s283_s21 + $0x8] sm:$0xff]  ;;  %s1218_s3 = scalar_lea.vmem [#allocation9], %s714_s5  ;;  %p718_p8 = scmp.ne.s32.totalorder %s1013_s24, 0 }
  0x3b   : > { %330 = sbr.rel (%p718_p8) target bundleno = 66 (0x42), region = 60 }
  0x40   : > { %v1035_v2 = vmov 0.0  }
  0x41   : > { %331 = vst [vmem:[#allocation2] sm:$0x3] %v1035_v2 }
  0x42 PF: > { %p719_p4 = scmp.le.s32.totalorder %s1013_s24, 0 }
  0x44   : > { %335 = sbr.rel (%p719_p4) target bundleno = 75 (0x4b), region = 64 }
  0x49   : > { %v336_v3 = vld [vmem:[#allocation2 + $0x10] sm:$0x3] }
  0x4a   : > { %337 = vst [vmem:[#allocation2] sm:$0x3] %v336_v3 }
  0x4b PF: > { %v441_v4 = vld [vmem:[#allocation6 + $0x178] sm:$0xff]  ;;  %v440_v5 = vld [vmem:[#allocation6 + $0x170] sm:$0xff]  ;;  %338 = vst [vmem:[#allocation2 + $0x2] sm:$0xff] %v1214_v0  ;;  %v439_v9 = vld [vmem:[#allocation6 + $0x168] sm:$0xff]  ;;  %s1319_s29 = sld [smem:[#allocation18_spill]]  ;;  %s721_s18 = sshll.u32 %s1013_s24, 1 }
  0x4c   : > { %v376_v6 = vld [vmem:[#allocation6 + $0xf8] sm:$0xff]  ;;  %442 = vmatpush.msra.mxu2 %v441_v4  ;;  %v375_v8 = vld [vmem:[#allocation6 + $0xf0] sm:$0xff]  ;;  %339 = vst [vmem:[#allocation2 + $0xa] sm:$0xff] %v1216_v1  ;;  %v374_v11 = vld [vmem:[#allocation6 + $0xe8] sm:$0xff]  ;;  %s1320_s16 = sld [smem:[#allocation19_spill]]  ;;  %s722_s19 = sshll.u32 %s1017_s25, 3 }
  0x4d   : > { %377 = vmatpush.msra.mxu0 %v376_v6  ;;  %v357_v7 = vld [vmem:[#allocation6 + $0x78] sm:$0xff]  ;;  %v356_v10 = vld [vmem:[#allocation6 + $0x70] sm:$0xff]  ;;  %v355_v12 = vld [vmem:[#allocation6 + $0x68] sm:$0xff]  ;;  %s588_s30 = sadd.s32 %s722_s19, %s721_s18  ;;  %s1321_s13 = sld [smem:[#allocation21_spill]] }
  0x4e   : > { %400 = vmatpush.msra.mxu1 %v357_v7  ;;  %443 = vmatpush.msra.mxu2 %v440_v5  ;;  %v438_v13 = vld [vmem:[#allocation6 + $0x160] sm:$0xff]  ;;  %v437_v16 = vld [vmem:[#allocation6 + $0x158] sm:$0xff]  ;;  %v436_v19 = vld [vmem:[#allocation6 + $0x150] sm:$0xff]  ;;  %s723_s8 = sshll.u32 %s588_s30, 3  ;;  %s591_s5 = sshll.u32 %s1218_s3, 4  ;;  %s592_s5 = int_to_ptr.vmem [resolvable:$true] %s591_s5 }
  0x4f   : > { %378 = vmatpush.msra.mxu0 %v375_v8  ;;  %v373_v14 = vld [vmem:[#allocation6 + $0xe0] sm:$0xff]  ;;  %v372_v17 = vld [vmem:[#allocation6 + $0xd8] sm:$0xff]  ;;  %v371_v20 = vld [vmem:[#allocation6 + $0xd0] sm:$0xff]  ;;  %s577_s21 = scalar_lea.sflag [#allocation5], %s1202_s1 }
  0x50   : > { %401 = vmatpush.msra.mxu1 %v356_v10  ;;  %444 = vmatpush.msra.mxu2 %v439_v9  ;;  %v354_v15 = vld [vmem:[#allocation6 + $0x60] sm:$0xff]  ;;  %v353_v18 = vld [vmem:[#allocation6 + $0x58] sm:$0xff]  ;;  %v352_v21 = vld [vmem:[#allocation6 + $0x50] sm:$0xff] }
  0x51   : > { %379 = vmatpush.msra.mxu0 %v374_v11  ;;  %v435_v22 = vld [vmem:[#allocation6 + $0x148] sm:$0xff]  ;;  %v434_v25 = vld [vmem:[#allocation6 + $0x140] sm:$0xff]  ;;  %v433_v28 = vld [vmem:[#allocation6 + $0x138] sm:$0xff] }
  0x52   : > { %402 = vmatpush.msra.mxu1 %v355_v12  ;;  %445 = vmatpush.msra.mxu2 %v438_v13  ;;  %v370_v23 = vld [vmem:[#allocation6 + $0xc8] sm:$0xff]  ;;  %v369_v26 = vld [vmem:[#allocation6 + $0xc0] sm:$0xff]  ;;  %v368_v29 = vld [vmem:[#allocation6 + $0xb8] sm:$0xff] }
  0x53   : > { %380 = vmatpush.msra.mxu0 %v373_v14  ;;  %v351_v24 = vld [vmem:[#allocation6 + $0x48] sm:$0xff]  ;;  %v350_v27 = vld [vmem:[#allocation6 + $0x40] sm:$0xff]  ;;  %v432_v30 = vld [vmem:[#allocation6 + $0x130] sm:$0xff]  ;;  %s590_s11 = scalar_lea.hbm %s1321_s13, %s723_s8 }
  0x54   : > { %403 = vmatpush.msra.mxu1 %v354_v15  ;;  %446 = vmatpush.msra.mxu2 %v437_v16  ;;  %v349_v31 = vld [vmem:[#allocation6 + $0x38] sm:$0xff]  ;;  %v431_v32 = vld [vmem:[#allocation6 + $0x128] sm:$0xff]  ;;  %v367_v33 = vld [vmem:[#allocation6 + $0xb0] sm:$0xff]  ;;  %s593_s6 = sshll.u32 %s590_s11, 4  ;;  %s594_s6 = int_to_ptr.hbm [resolvable:$true] %s593_s6 }
  0x55   : > { %381 = vmatpush.msra.mxu0 %v372_v17  ;;  %v348_v34 = vld [vmem:[#allocation6 + $0x30] sm:$0xff]  ;;  %v366_v35 = vld [vmem:[#allocation6 + $0xa8] sm:$0xff]  ;;  %v548_v36 = vld [vmem:[#allocation8 + $0x78] sm:$0xff]  ;;  %s941_s4 = sshra.s32 %s594_s6, 4  ;;  %s942_s4 = int_to_ptr.hbm [resolvable:$true] %s941_s4 }
  0x56   : > { %404 = vmatpush.msra.mxu1 %v353_v18  ;;  %447 = vmatpush.msra.mxu2 %v436_v19  ;;  %v547_v37 = vld [vmem:[#allocation8 + $0x70] sm:$0xff]  ;;  %v347_v38 = vld [vmem:[#allocation6 + $0x28] sm:$0xff]  ;;  %v430_v39 = vld [vmem:[#allocation6 + $0x120] sm:$0xff]  ;;  %s943_s7 = scalar_lea.hbm %s942_s4, 16  ;;  %p948_p12 = scmp.lt.s32.totalorder %s942_s4, %s1321_s13 }
  0x57   : > { %382 = vmatpush.msra.mxu0 %v371_v20  ;;  %549 = vmatpush.msra.mxu3 %v548_v36  ;;  %v365_v40 = vld [vmem:[#allocation6 + $0xa0] sm:$0xff]  ;;  %v429_v42 = vld [vmem:[#allocation6 + $0x118] sm:$0xff]  ;;  %v428_v45 = vld [vmem:[#allocation6 + $0x110] sm:$0xff]  ;;  %p944_p1 = scmp.ne.s32.totalorder %s942_s4, %s943_s7 }
  0x58   : > { %405 = vmatpush.msra.mxu1 %v352_v21  ;;  %448 = vmatpush.msra.mxu2 %v435_v22  ;;  %v346_v41 = vld [vmem:[#allocation6 + $0x20] sm:$0xff]  ;;  %v364_v43 = vld [vmem:[#allocation6 + $0x98] sm:$0xff]  ;;  %v363_v46 = vld [vmem:[#allocation6 + $0x90] sm:$0xff] }
  0x59   : > { %383 = vmatpush.msra.mxu0 %v370_v23  ;;  %550 = vmatpush.msra.mxu3 %v547_v37  ;;  %v345_v44 = vld [vmem:[#allocation6 + $0x18] sm:$0xff]  ;;  %v344_v47 = vld [vmem:[#allocation6 + $0x10] sm:$0xff]  ;;  %v427_v48 = vld [vmem:[#allocation6 + $0x108] sm:$0xff]  ;;  %p945_p10 = pnand %p944_p1, %p1174_p5 }
  0x5a   : > { %406 = vmatpush.msra.mxu1 %v351_v24  ;;  %449 = vmatpush.msra.mxu2 %v434_v25  ;;  %v362_v49 = vld [vmem:[#allocation6 + $0x88] sm:$0xff]  ;;  %v426_v51 = vld [vmem:[#allocation6 + $0x100] sm:$0xff]  ;;  %v359_v56 = vld [vmem:[#allocation2 + $0x9] sm:$0xff] }
  0x5b   : > { %384 = vmatpush.msra.mxu0 %v369_v26  ;;  %v343_v50 = vld [vmem:[#allocation6 + $0x8] sm:$0xff]  ;;  %v361_v52 = vld [vmem:[#allocation6 + $0x80] sm:$0xff]  ;;  %v341_v57 = vld [vmem:[#allocation2 + $0x8] sm:$0xff]  ;;  %p946_p11 = pneg %p945_p10 }
  0x5c   : > { %407 = vmatpush.msra.mxu1 %v350_v27  ;;  %450 = vmatpush.msra.mxu2 %v433_v28  ;;  %v342_v53 = vld [vmem:[#allocation6] sm:$0xff]  ;;  %v358_v54 = vld [vmem:[#allocation2 + $0x1] sm:$0xff]  ;;  %v544_v60 = vld [vmem:[#allocation8 + $0x58] sm:$0xff] }
  0x5d   : > { %385 = vmatpush.msra.mxu0 %v368_v29  ;;  %v340_v55 = vld [vmem:[#allocation2] sm:$0xff]  ;;  %v545_v59 = vld [vmem:[#allocation8 + $0x60] sm:$0xff]  ;;  %v543_v61 = vld [vmem:[#allocation8 + $0x50] sm:$0xff] }
  0x5e   : > { %408 = vmatpush.msra.mxu1 %v349_v31  ;;  %451 = vmatpush.msra.mxu2 %v432_v30  ;;  %v546_v58 = vld [vmem:[#allocation8 + $0x68] sm:$0xff]  ;;  %v541_v63 = vld [vmem:[#allocation8 + $0x40] sm:$0xff]  ;;  %v540_v2 = vld [vmem:[#allocation8 + $0x38] sm:$0xff] }
  0x5f   : > { %386 = vmatpush.msra.mxu0 %v367_v33  ;;  %551 = vmatpush.msra.mxu3 %v546_v58  ;;  %v542_v62 = vld [vmem:[#allocation8 + $0x48] sm:$0xff]  ;;  %v539_v3 = vld [vmem:[#allocation8 + $0x30] sm:$0xff]  ;;  %v537_v5 = vld [vmem:[#allocation8 + $0x20] sm:$0xff] }
  0x60   : > { %409 = vmatpush.msra.mxu1 %v348_v34  ;;  %452 = vmatpush.msra.mxu2 %v431_v32  ;;  %v538_v4 = vld [vmem:[#allocation8 + $0x28] sm:$0xff]  ;;  %v536_v6 = vld [vmem:[#allocation8 + $0x18] sm:$0xff]  ;;  %v535_v7 = vld [vmem:[#allocation8 + $0x10] sm:$0xff] }
  0x61   : > { %387 = vmatpush.msra.mxu0 %v366_v35  ;;  %552 = vmatpush.msra.mxu3 %v545_v59  ;;  %v534_v8 = vld [vmem:[#allocation8 + $0x8] sm:$0xff]  ;;  %v533_v9 = vld [vmem:[#allocation8] sm:$0xff] }
  0x62   : > { %410 = vmatpush.msra.mxu1 %v347_v38  ;;  %453 = vmatpush.msra.mxu2 %v430_v39  ;;  %v830_v13 = vld [vmem:[%s1286_s2] ss:$0 sm:$0xff] }
  0x63   : > { %388 = vmatpush.msra.mxu0 %v365_v40  ;;  %553 = vmatpush.msra.mxu3 %v544_v60 }
  0x64   : > { %411 = vmatpush.msra.mxu1 %v346_v41  ;;  %454 = vmatpush.msra.mxu2 %v429_v42 }
  0x65   : > { %389 = vmatpush.msra.mxu0 %v364_v43  ;;  %554 = vmatpush.msra.mxu3 %v543_v61 }
  0x66   : > { %412 = vmatpush.msra.mxu1 %v345_v44  ;;  %455 = vmatpush.msra.mxu2 %v428_v45 }
  0x67   : > { %390 = vmatpush.msra.mxu0 %v363_v46  ;;  %555 = vmatpush.msra.mxu3 %v542_v62 }
  0x68   : > { %413 = vmatpush.msra.mxu1 %v344_v47  ;;  %456 = vmatpush.msra.mxu2 %v427_v48  ;;  %v831_v48 = vld [vmem:[%s1319_s29] ss:$0 sm:$0xff]  ;;  %s947_s29 = scalar_lea.hbm %s1321_s13, 128 }
  0x69   : > { %391 = vmatpush.msra.mxu0 %v362_v49  ;;  %556 = vmatpush.msra.mxu3 %v541_v63  ;;  %p949_p13 = scmp.lt.s32.totalorder %s947_s29, %s943_s7 }
  0x6a   : > { %414 = vmatpush.msra.mxu1 %v343_v50  ;;  %457 = vmatpush.msra.mxu2 %v426_v51 }
  0x6b   : > { %392 = vmatpush.msra.mxu0 %v361_v52  ;;  %458 = vmatmul.f32.vlgmr.msra.gmra.mxu2 %v1214_v0  ;;  %v832_v52 = vld [vmem:[%s1320_s16] ss:$0 sm:$0xff]  ;;  %p950_p0 = por %p949_p13, %p948_p12 }
  0x6c   : > { %415 = vmatpush.msra.mxu1 %v342_v53  ;;  %393 = vmatmul.f32.vlgmr.msra.gmra.mxu0 %v358_v54 }
  0x6d   : > { %416 = vmatmul.f32.vlgmr.msra.gmra.mxu1 %v340_v55  ;;  %557 = vmatpush.msra.mxu3 %v540_v2  ;;  %p951_p3 = pnand %p950_p0, %p946_p11 }
  0x6f   : > { %558 = vmatpush.msra.mxu3 %v539_v3 }
  0x71   : > { %559 = vmatpush.msra.mxu3 %v538_v4 }
  0x73   : > { %461 = vmatmul.f32.gmra.mxu2 %v1216_v1  ;;  %560 = vmatpush.msra.mxu3 %v537_v5 }
  0x74   : > { %396 = vmatmul.f32.gmra.mxu0 %v359_v56 }
  0x75   : > { %419 = vmatmul.f32.gmra.mxu1 %v341_v57  ;;  %561 = vmatpush.msra.mxu3 %v536_v6 }
  0x77   : > { %562 = vmatpush.msra.mxu3 %v535_v7 }
  0x79   : > { %563 = vmatpush.msra.mxu3 %v534_v8 }
  0x7b   : > { %564 = vmatpush.msra.mxu3 %v533_v9 }
  0x7c   : > { %565 = vmatmul.f32.vlgmr.msra.gmra.mxu3 %v1214_v0 }
  0x84   : > { %568 = vmatmul.f32.gmra.mxu3 %v1216_v1 }
  0xe9   : > { %v394_v10 = vpop.f32.mrf.mxu0 }
  0xea   : > { %v417_v11 = vpop.f32.mrf.mxu1 }
  0xeb   : > { %v418_v12 = vadd.f32 %v417_v11, %v394_v10 }
  0xee   : > { %v459_v14 = vpop.f32.mrf.mxu2 }
  0xef   : > { %v465_v15 = vadd.f32 %v459_v14, %v418_v12 }
  0xf1   : > { %v471_v16 = vadd.f32 %v830_v13, %v465_v15  ;;  %v397_v17 = vpop.f32.mrf.mxu0 }
  0xf2   : > { %v420_v18 = vpop.f32.mrf.mxu1 }
  0xf3   : > { %473 = vadd.xlane.f32.xlu0 %v471_v16  ;;  %v421_v19 = vadd.f32 %v420_v18, %v397_v17  ;;  %v477_v20 = vmul.f32 %v471_v16, %v471_v16 }
  0xf5   : > { %479 = vadd.xlane.f32.xlu1 %v477_v20 }
  0xf6   : > { %v462_v21 = vpop.f32.mrf.mxu2 }
  0xf7   : > { %v466_v0 = vadd.f32 %v462_v21, %v421_v19 }
  0xf9   : > { %v472_v22 = vadd.f32 %v830_v13, %v466_v0 }
  0xfb   : > { %475 = vadd.xlane.f32.xlu0 %v472_v22  ;;  %v478_v23 = vmul.f32 %v472_v22, %v472_v22 }
  0xfd   : > { %481 = vadd.xlane.f32.xlu1 %v478_v23 }
  0xff   : > { %v566_v57 = vpop.f32.mrf.mxu3 }
 0x107   : > { %v569_v4 = vpop.f32.mrf.mxu3 }
 0x166   : > { %v474_v24 = vpop.xlane.xlu0 %473 }
 0x167   : > { %v483_v25 = vmul.f32 0.03125, %v474_v24 }
 0x168   : > { %v480_v26 = vpop.xlane.xlu1 %479 }
 0x169   : > { %v487_v27 = vmul.f32 %v483_v25, %v483_v25  ;;  %v485_v28 = vmul.f32 0.03125, %v480_v26  ;;  %v493_v46 = vsub.f32 %v471_v16, %v483_v25 }
 0x16b   : > { %v489_v29 = vsub.f32 %v485_v28, %v487_v27 }
 0x16d   : > { %v491_v1 = vmax.f32 %v489_v29, 0.0 }
 0x16e   : > { %v476_v30 = vpop.xlane.xlu0 %475 }
 0x16f   : > { %v495_v31 = vadd.f32 1e-05, %v491_v1  ;;  %v484_v32 = vmul.f32 0.03125, %v476_v30 }
 0x170   : > { %v482_v33 = vpop.xlane.xlu1 %481 }
 0x171   : > { %833 = vrsqrt.f32 %v495_v31  ;;  %v488_v34 = vmul.f32 %v484_v32, %v484_v32  ;;  %v486_v35 = vmul.f32 0.03125, %v482_v33  ;;  %vm503_vm1 = vweird.f32 %v495_v31 }
 0x172   : > { %v494_v60 = vsub.f32 %v472_v22, %v484_v32 }
 0x173   : > { %v490_v36 = vsub.f32 %v486_v35, %v488_v34 }
 0x175   : > { %v492_v37 = vmax.f32 %v490_v36, 0.0 }
 0x177   : > { %v834_v38 = vpop.eup %833  ;;  %v496_v40 = vadd.f32 1e-05, %v492_v37 }
 0x178   : > { %v498_v39 = vmul.f32 %v834_v38, %v495_v31  ;;  %vm504_vm0 = vweird.f32 %v834_v38 }
 0x179   : > { %835 = vrsqrt.f32 %v496_v40  ;;  %vm505_vm2 = vmor %vm503_vm1, %vm504_vm0  ;;  %vm513_vm4 = vweird.f32 %v496_v40 }
 0x17a   : > { %v499_v41 = vmul.f32 %v834_v38, %v498_v39 }
 0x17c   : > { %v500_v42 = vmul.f32 0.5, %v499_v41 }
 0x17e   : > { %v501_v43 = vsub.f32 1.5, %v500_v42 }
 0x17f   : > { %v836_v44 = vpop.eup %835 }
 0x180   : > { %v502_v45 = vmul.f32 %v834_v38, %v501_v43  ;;  %v508_v47 = vmul.f32 %v836_v44, %v496_v40  ;;  %vm514_vm3 = vweird.f32 %v836_v44 }
 0x181   : > { %vm515_vm5 = vmor %vm513_vm4, %vm514_vm3 }
 0x182   : > { %v506_v49 = vsel %vm505_vm2, %v834_v38, %v502_v45  ;;  %v509_v50 = vmul.f32 %v836_v44, %v508_v47 }
 0x183   : > { %v517_v51 = vmul.f32 %v506_v49, %v493_v46 }
 0x184   : > { %v510_v53 = vmul.f32 0.5, %v509_v50 }
 0x185   : > { %v523_v54 = vmul.f32 %v831_v48, %v517_v51 }
 0x186   : > { %v511_v55 = vsub.f32 1.5, %v510_v53 }
 0x187   : > { %v529_v56 = vadd.f32 %v832_v52, %v523_v54 }
 0x188   : > { %v512_v58 = vmul.f32 %v836_v44, %v511_v55 }
 0x189   : > { %v531_v59 = vmax.f32 %v529_v56, 0.0 }
 0x18a   : > { %v516_v62 = vsel %vm515_vm5, %v836_v44, %v512_v58 }
 0x18b   : > { %v572_v61 = vadd.f32 %v566_v57, %v531_v59  ;;  %v518_v63 = vmul.f32 %v516_v62, %v494_v60 }
 0x18d   : > { %574 = vst [vmem:[%s1218_s3] sm:$0xff] %v572_v61  ;;  %v524_v2 = vmul.f32 %v831_v48, %v518_v63 }
 0x18f   : > { %v530_v3 = vadd.f32 %v832_v52, %v524_v2 }
 0x191   : > { %v532_v5 = vmax.f32 %v530_v3, 0.0 }
 0x193   : > { %v573_v6 = vadd.f32 %v569_v4, %v532_v5 }
 0x195   : > { %575 = vst [vmem:[%s1218_s3 + $0x8] sm:$0xff] %v573_v6 }
 0x196   : > { %954 = shalt.err (!%p951_p3)
}
 0x197   : > { %s1036_s1 = smov 128   ;;  %s1037_s3 = smov 8  }
 0x198   : > { %736 = dma.vmem_to_hbm [thread:$0]  (%p1174_p5), %s592_s5, 256, %s594_s6, %s577_s21, %s1036_s1, %s1036_s1, %s1037_s3  }
 0x199 PF: > { %s1323_s16 = sld [smem:[#allocation13_spill]]  ;;  %p758_p7 = scmp.ge.s32.totalorder %s1029_s28, 2 }
 0x19b   : > { %p750_p9 = pnand %p758_p7, %p1132_p6 }
 0x19d   : > { %p751_p2 = pneg %p750_p9 }
 0x19f   : > { %s608_s19 = sand.u32 1, %s1323_s16  }
 0x1a0   : > { %s609_s30 = scalar_lea.sflag [#allocation5], %s608_s19 }
 0x1a1   : > { %996 = dma.done.wait (%p751_p2), %s609_s30, 256  }
 0x1a2   : > { %998 = vsyncadd (%p751_p2), %s609_s30, 4294967040  ;;  %s23_s28 = sadd.s32 1, %s1029_s28   ;;  %s1325_s8 = sld [smem:[#allocation15_spill]] }
 0x1a3   : > { %p20_p8 = scmp.ge.s32.totalorder %s23_s28, 10   ;;  %s1326_s21 = smov %s1005_s22 }
 0x1a4   : > { %s1327_s22 = smov %s1009_s23  ;;  %s1328_s23 = smov %s1187_s10 }
 0x1a5   : > { %s1329_s24 = smov %s1021_s26  ;;  %s1330_s25 = smov %s1025_s27 }
 0x1a6   : > { %s1332_s27 = smov %s1338_s15  ;;  %22 = sbr.rel (!%p20_p8) target bundleno = 14 (0xe), region = 107 }
 0x1a8   : > { %s1331_s26 = smov %s1325_s8 }
 0x1ab   :  { %615 = vsyncpa [#allocation4], 1 }
 0x1ac   :  { %617 = vsyncpa [#allocation4 + $0x1], 1 }
 0x1ad   :  { %618 = vsyncpa [#allocation7], 1 }
 0x1ae   :  { %619 = vsyncpa [#allocation5], 1 }
 0x1af   :  { %621 = vsyncpa [#allocation5 + $0x1], 1 }

</bundles_post_ra>
